<compile_context>
chip_gen: v7x
topology: tpu7x:2x2x1
jax: 0.10.0
libtpu: 0.0.40
codegen_flags: <defaults>
</compile_context>

<pallas_src>
import jax
import jax.numpy as jnp
from jax.experimental import pallas as pl
from jax.experimental.pallas import tpu as pltpu

# ---- problem sizes (small, consistent with the forward pass) ---------------
B, C, H, W = 2, 4, 16, 16      # initial_obs image batch (NCHW)
S, V = 8, 64                   # instruction: token ids per sample, vocab size
D = 32                         # shared hidden / embedding dim
L = 4                          # length of generated skill-description sequence
HFF = 64                       # behavior-LLM hidden width
E = 32                         # final skill-embedding dim

_VMEM_SPEC = pl.BlockSpec(memory_space=pltpu.MemorySpace.VMEM)


# ---------------------------------------------------------------------------
# Single fused kernel: captioning surrogate + instruction encoder +
# Behavior_LLM surrogate + SkillEmbedder.  Everything lives in vregs.
# ---------------------------------------------------------------------------
def _front_part_kernel(x_ref, ids_ref,
                       wcap_ref, bcap_ref, emb_ref,
                       w1_ref, b1_ref, w2sk_ref, b2sk_ref,
                       segsum_ref, segbcast_ref,
                       out_ref):
    # --- Image_Captioning_Model surrogate ------------------------------------
    # x arrives as (B, C, H*W); global average pool = cross-lane sum (XLU),
    # with the 1/(H*W) scale pre-folded into w_cap.  Then channel projection
    # (K=4 bf16 matmul) + tanh, i.e. "global avg pool -> linear -> tanh".
    pooled = jnp.sum(x_ref[...], axis=-1)                            # [B, C] f32
    cap = jnp.tanh(
        jnp.dot(pooled.astype(jnp.bfloat16), wcap_ref[...],
                preferred_element_type=jnp.float32)
        + bcap_ref[...])                                             # [B, D]

    # --- instruction token encoder --------------------------------------------
    # Mean of token embeddings == token-count matrix @ (tok_emb / S).
    # Counts are small integers -> exact in bf16.
    ids = ids_ref[...]                                               # [B, S] int32
    iota_v = jax.lax.broadcasted_iota(jnp.int32, (B, S, V), 2)
    counts = jnp.sum((ids[..., None] == iota_v).astype(jnp.float32),
                     axis=1)                                         # [B, V]
    instr = jnp.dot(counts.astype(jnp.bfloat16), emb_ref[...],
                    preferred_element_type=jnp.float32)              # [B, D]

    # TODO(synk): the PyTorch module concatenates python strings
    # (caption + '. In this situation, I need to ' + instruction); there is no
    # numeric equivalent, so the two pooled embeddings are fused by addition.
    fused = cap + instr                                              # [B, D]

    # --- Behavior_LLM surrogate + SkillEmbedder projection (folded) ----------
    z = jnp.tanh(
        jnp.dot(fused.astype(jnp.bfloat16), w1_ref[...],
                preferred_element_type=jnp.float32)
        + b1_ref[...])                                               # [B, HFF]
    # w2sk = w2 @ kron(I_L, w_sk) folded at init (no nonlinearity in between,
    # and `seq` is never an output, so this is exact).
    e = (jnp.dot(z.astype(jnp.bfloat16), w2sk_ref[...],
                 preferred_element_type=jnp.float32)
         + b2sk_ref[...])                                            # [B, L*E]

    # --- per-skill L2 normalization -------------------------------------------
    # Per-E-block sum-of-squares via the two kron factors of the old block
    # mask: (L*E, L) segment-sum then (L, L*E) broadcast — relayout-free.
    sq = e * e                                                       # [B, L*E] f32
    blk_sum = jnp.dot(sq, segsum_ref[...],
                      preferred_element_type=jnp.float32)            # [B, L]
    norms = jnp.dot(blk_sum, segbcast_ref[...],
                    preferred_element_type=jnp.float32)              # [B, L*E]
    # NOTE: eps is added to the squared norm; torch F.normalize clamps the norm
    # itself (eps=1e-12) — differs only for near-zero skill vectors.
    out_ref[...] = e * jax.lax.rsqrt(norms + 1e-6)                   # [B, L*E]


# ---------------------------------------------------------------------------
# Python wrapper: one gridless pallas_call; only free metadata reshapes outside.
# ---------------------------------------------------------------------------
def front_part_forward(initial_obs, instruction_ids, params):
    x3 = initial_obs.reshape(B, C, H * W)              # free reshape of NCHW

    out_flat = pl.pallas_call(
        _front_part_kernel,
        out_shape=jax.ShapeDtypeStruct((B, L * E), jnp.float32),
        in_specs=[_VMEM_SPEC] * 11,
        out_specs=_VMEM_SPEC,
    )(x3, instruction_ids,
      params["w_cap"], params["b_cap"], params["tok_emb_mean"],
      params["w1"], params["b1"], params["w2sk"], params["b2sk"],
      params["seg_sum"], params["seg_bcast"])

    return out_flat.reshape(B, L, E)                   # skill_embedding_seq


def init_params(key):
    ks = jax.random.split(key, 7)
    scale = 0.1
    # Base (unfused) parameters — same shapes/seeds as the reference version.
    w_cap = scale * jax.random.normal(ks[0], (C, D), jnp.float32)
    tok_emb = scale * jax.random.normal(ks[1], (V, D), jnp.float32)
    w1 = scale * jax.random.normal(ks[2], (D, HFF), jnp.float32)
    w2 = scale * jax.random.normal(ks[3], (HFF, L * D), jnp.float32)
    w_sk = scale * jax.random.normal(ks[4], (D, E), jnp.float32)
    b_sk = jnp.zeros((1, E), jnp.float32)
    b2 = jnp.zeros((1, L * D), jnp.float32)

    # Host-side constant folds (all exact):
    #   * 1/(H*W) pooling scale folded into w_cap
    #   * 1/S token-mean scale folded into the embedding table
    #   * w2 @ blockdiag(w_sk) folded into one (HFF, L*E) weight (+ bias)
    w_sk_blk = jnp.kron(jnp.eye(L, dtype=jnp.float32), w_sk)          # (L*D, L*E)
    w2sk = w2 @ w_sk_blk                                              # (HFF, L*E)
    b2sk = b2 @ w_sk_blk + jnp.tile(b_sk, (1, L))                     # (1, L*E)

    return {
        # MXU weights stored in bf16 (native MXU path; elementwise stays f32)
        "w_cap": (w_cap * (1.0 / (H * W))).astype(jnp.bfloat16),      # (C, D)
        "b_cap": jnp.zeros((1, D), jnp.float32),
        "tok_emb_mean": (tok_emb * (1.0 / S)).astype(jnp.bfloat16),   # (V, D)
        "w1": w1.astype(jnp.bfloat16),                                # (D, HFF)
        "b1": jnp.zeros((1, HFF), jnp.float32),
        "w2sk": w2sk.astype(jnp.bfloat16),                            # (HFF, L*E)
        "b2sk": b2sk,                                                 # (1, L*E) f32
        # kron factors of the old (L*E, L*E) block-of-ones mask (4 KiB total,
        # kept f32 so the L2 normalization stays full precision)
        "seg_sum": jnp.kron(jnp.eye(L, dtype=jnp.float32),
                            jnp.ones((E, 1), jnp.float32)),           # (L*E, L)
        "seg_bcast": jnp.kron(jnp.eye(L, dtype=jnp.float32),
                              jnp.ones((1, E), jnp.float32)),         # (L, L*E)
    }


if __name__ == "__main__":
    key = jax.random.PRNGKey(0)
    k_obs, k_instr, k_param = jax.random.split(key, 3)

    initial_obs = jax.random.normal(k_obs, (B, C, H, W), jnp.float32)   # NCHW
    instruction_ids = jax.random.randint(k_instr, (B, S), 0, V, jnp.int32)
    params = init_params(k_param)

    out = front_part_forward(initial_obs, instruction_ids, params)
    out = jax.block_until_ready(out)
    assert out.shape == (B, L, E) and out.dtype == jnp.float32
    assert bool(jnp.all(jnp.isfinite(out)))
    print("KERNEL_OK")
</pallas_src>

<mosaic_0001>
module attributes {stable_mosaic.version = 11 : i64} {
  func.func @_front_part_kernel(%arg0: memref<2x4x256xf32, #tpu.memory_space<vmem>>, %arg1: memref<2x8xi32, #tpu.memory_space<vmem>>, %arg2: memref<4x32xbf16, #tpu.memory_space<vmem>>, %arg3: memref<1x32xf32, #tpu.memory_space<vmem>>, %arg4: memref<64x32xbf16, #tpu.memory_space<vmem>>, %arg5: memref<32x64xbf16, #tpu.memory_space<vmem>>, %arg6: memref<1x64xf32, #tpu.memory_space<vmem>>, %arg7: memref<64x128xbf16, #tpu.memory_space<vmem>>, %arg8: memref<1x128xf32, #tpu.memory_space<vmem>>, %arg9: memref<128x4xf32, #tpu.memory_space<vmem>>, %arg10: memref<4x128xf32, #tpu.memory_space<vmem>>, %arg11: memref<2x128xf32, #tpu.memory_space<vmem>>) attributes {dimension_semantics = [], scalar_prefetch = 0 : i64, scratch_operands = 0 : i64, tpu.core_type = #tpu.core_type<tc>} {
    %c0 = arith.constant 0 : index
    %c0_0 = arith.constant 0 : index
    %c0_1 = arith.constant 0 : index
    %0 = vector.load %arg0[%c0, %c0_0, %c0_1] : memref<2x4x256xf32, #tpu.memory_space<vmem>>, vector<2x4x256xf32>
    %cst = arith.constant dense<0.000000e+00> : vector<2x4xf32>
    %1 = vector.multi_reduction <add>, %0, %cst [2] : vector<2x4x256xf32> to vector<2x4xf32>
    %2 = arith.truncf %1 : vector<2x4xf32> to vector<2x4xbf16>
    %c0_2 = arith.constant 0 : index
    %c0_3 = arith.constant 0 : index
    %3 = vector.load %arg2[%c0_2, %c0_3] : memref<4x32xbf16, #tpu.memory_space<vmem>>, vector<4x32xbf16>
    %cst_4 = arith.constant dense<0.000000e+00> : vector<2x32xf32>
    %4 = tpu.matmul %2, %3, %cst_4 {dimension_numbers = #tpu.dot_dimension_numbers<[1], [0], [0], [1], [0, 0, 1, 1], [], []>} : vector<2x4xbf16>, vector<4x32xbf16>, vector<2x32xf32> -> vector<2x32xf32>
    %c0_5 = arith.constant 0 : index
    %c0_6 = arith.constant 0 : index
    %5 = vector.load %arg3[%c0_5, %c0_6] : memref<1x32xf32, #tpu.memory_space<vmem>>, vector<1x32xf32>
    %6 = vector.broadcast %5 : vector<1x32xf32> to vector<2x32xf32>
    %7 = arith.addf %4, %6 : vector<2x32xf32>
    %8 = math.tanh %7 : vector<2x32xf32>
    %c0_7 = arith.constant 0 : index
    %c0_8 = arith.constant 0 : index
    %9 = vector.load %arg1[%c0_7, %c0_8] : memref<2x8xi32, #tpu.memory_space<vmem>>, vector<2x8xi32>
    %10 = tpu.iota {dimensions = array<i32: 2>} : vector<2x8x64xi32>
    %11 = vector.shape_cast %9 : vector<2x8xi32> to vector<2x8x1xi32>
    %12 = vector.broadcast %11 : vector<2x8x1xi32> to vector<2x8x64xi32>
    %13 = arith.cmpi eq, %12, %10 : vector<2x8x64xi32>
    %14 = arith.extui %13 : vector<2x8x64xi1> to vector<2x8x64xi32>
    %15 = arith.sitofp %14 : vector<2x8x64xi32> to vector<2x8x64xf32>
    %cst_9 = arith.constant dense<0.000000e+00> : vector<2x64xf32>
    %16 = vector.multi_reduction <add>, %15, %cst_9 [1] : vector<2x8x64xf32> to vector<2x64xf32>
    %17 = arith.truncf %16 : vector<2x64xf32> to vector<2x64xbf16>
    %c0_10 = arith.constant 0 : index
    %c0_11 = arith.constant 0 : index
    %18 = vector.load %arg4[%c0_10, %c0_11] : memref<64x32xbf16, #tpu.memory_space<vmem>>, vector<64x32xbf16>
    %cst_12 = arith.constant dense<0.000000e+00> : vector<2x32xf32>
    %19 = tpu.matmul %17, %18, %cst_12 {dimension_numbers = #tpu.dot_dimension_numbers<[1], [0], [0], [1], [0, 0, 1, 1], [], []>} : vector<2x64xbf16>, vector<64x32xbf16>, vector<2x32xf32> -> vector<2x32xf32>
    %20 = arith.addf %8, %19 : vector<2x32xf32>
    %21 = arith.truncf %20 : vector<2x32xf32> to vector<2x32xbf16>
    %c0_13 = arith.constant 0 : index
    %c0_14 = arith.constant 0 : index
    %22 = vector.load %arg5[%c0_13, %c0_14] : memref<32x64xbf16, #tpu.memory_space<vmem>>, vector<32x64xbf16>
    %cst_15 = arith.constant dense<0.000000e+00> : vector<2x64xf32>
    %23 = tpu.matmul %21, %22, %cst_15 {dimension_numbers = #tpu.dot_dimension_numbers<[1], [0], [0], [1], [0, 0, 1, 1], [], []>} : vector<2x32xbf16>, vector<32x64xbf16>, vector<2x64xf32> -> vector<2x64xf32>
    %c0_16 = arith.constant 0 : index
    %c0_17 = arith.constant 0 : index
    %24 = vector.load %arg6[%c0_16, %c0_17] : memref<1x64xf32, #tpu.memory_space<vmem>>, vector<1x64xf32>
    %25 = vector.broadcast %24 : vector<1x64xf32> to vector<2x64xf32>
    %26 = arith.addf %23, %25 : vector<2x64xf32>
    %27 = math.tanh %26 : vector<2x64xf32>
    %28 = arith.truncf %27 : vector<2x64xf32> to vector<2x64xbf16>
    %c0_18 = arith.constant 0 : index
    %c0_19 = arith.constant 0 : index
    %29 = vector.load %arg7[%c0_18, %c0_19] : memref<64x128xbf16, #tpu.memory_space<vmem>>, vector<64x128xbf16>
    %cst_20 = arith.constant dense<0.000000e+00> : vector<2x128xf32>
    %30 = tpu.matmul %28, %29, %cst_20 {dimension_numbers = #tpu.dot_dimension_numbers<[1], [0], [0], [1], [0, 0, 1, 1], [], []>} : vector<2x64xbf16>, vector<64x128xbf16>, vector<2x128xf32> -> vector<2x128xf32>
    %c0_21 = arith.constant 0 : index
    %c0_22 = arith.constant 0 : index
    %31 = vector.load %arg8[%c0_21, %c0_22] : memref<1x128xf32, #tpu.memory_space<vmem>>, vector<1x128xf32>
    %32 = vector.broadcast %31 : vector<1x128xf32> to vector<2x128xf32>
    %33 = arith.addf %30, %32 : vector<2x128xf32>
    %34 = arith.mulf %33, %33 : vector<2x128xf32>
    %c0_23 = arith.constant 0 : index
    %c0_24 = arith.constant 0 : index
    %35 = vector.load %arg9[%c0_23, %c0_24] : memref<128x4xf32, #tpu.memory_space<vmem>>, vector<128x4xf32>
    %cst_25 = arith.constant dense<0.000000e+00> : vector<2x4xf32>
    %36 = tpu.matmul %34, %35, %cst_25 {dimension_numbers = #tpu.dot_dimension_numbers<[1], [0], [0], [1], [0, 0, 1, 1], [], []>} : vector<2x128xf32>, vector<128x4xf32>, vector<2x4xf32> -> vector<2x4xf32>
    %c0_26 = arith.constant 0 : index
    %c0_27 = arith.constant 0 : index
    %37 = vector.load %arg10[%c0_26, %c0_27] : memref<4x128xf32, #tpu.memory_space<vmem>>, vector<4x128xf32>
    %cst_28 = arith.constant dense<0.000000e+00> : vector<2x128xf32>
    %38 = tpu.matmul %36, %37, %cst_28 {dimension_numbers = #tpu.dot_dimension_numbers<[1], [0], [0], [1], [0, 0, 1, 1], [], []>} : vector<2x4xf32>, vector<4x128xf32>, vector<2x128xf32> -> vector<2x128xf32>
    %cst_29 = arith.constant 9.99999997E-7 : f32
    %39 = vector.broadcast %cst_29 : f32 to vector<2x128xf32>
    %40 = arith.addf %38, %39 : vector<2x128xf32>
    %41 = math.rsqrt %40 : vector<2x128xf32>
    %42 = arith.mulf %33, %41 : vector<2x128xf32>
    %c0_30 = arith.constant 0 : index
    %c0_31 = arith.constant 0 : index
    %43 = vector.load %arg11[%c0_30, %c0_31] : memref<2x128xf32, #tpu.memory_space<vmem>>, vector<2x128xf32>
    tpu.vector_store %arg11[%c0_30, %c0_31], %42 {strides = array<i32>} : memref<2x128xf32, #tpu.memory_space<vmem>>, vector<2x128xf32>,
    return
  }
}

</mosaic_0001>

<bundles_post_ra>
// kernel: tpu_custom_call.1
= control target key start
LH: loop header
LB: loop body
LE: loop exit
PB: predicated region body
PF: predicated region fallthrough
CT: control target
= control target key end

     0   :  { %vm48_vm0 = vcmask 1043456   ;;  %v73_v2 = vlaneseq  ;;  %v791_v6 = vmov 0.0   ;;  %s1006_s0 = inlined_call_operand.vmem [shape: f32[2,4,256], index: 0, kind: input, shape index: {}]   ;;  %s1007_s1 = inlined_call_operand.vmem [shape: s32[2,8], index: 1, kind: input, shape index: {}]   ;;  %s1008_s2 = inlined_call_operand.vmem [shape: bf16[4,32], index: 2, kind: input, shape index: {}]   ;;  %s1009_s3 = inlined_call_operand.vmem [shape: f32[1,32], index: 3, kind: input, shape index: {}]   ;;  %s1010_s4 = inlined_call_operand.vmem [shape: bf16[64,32], index: 4, kind: input, shape index: {}]   ;;  %s1011_s5 = inlined_call_operand.vmem [shape: bf16[32,64], index: 5, kind: input, shape index: {}]   ;;  %s1012_s6 = inlined_call_operand.vmem [shape: f32[1,64], index: 6, kind: input, shape index: {}]   ;;  %s1013_s7 = inlined_call_operand.vmem [shape: bf16[64,128], index: 7, kind: input, shape index: {}]   ;;  %s1014_s8 = inlined_call_operand.vmem [shape: f32[1,128], index: 8, kind: input, shape index: {}]   ;;  %s1015_s9 = inlined_call_operand.vmem [shape: f32[128,4], index: 9, kind: input, shape index: {}]   ;;  %s1016_s10 = inlined_call_operand.vmem [shape: f32[4,128], index: 10, kind: input, shape index: {}]   ;;  %s1017_s11 = inlined_call_operand.hbm [shape: f32[2,128], index: 11, kind: output, shape index: {}]  }
   0x1   :  { %v40_v0 = vld [vmem:[%s1006_s0] sm:$0xff]  ;;  %v41_v1 = vld [vmem:[%s1006_s0 + $0x8] sm:$0xff]  ;;  %649 = vmatprep.subr.bf16.mxu1 %v791_v6  ;;  %643 = vmatprep.subr.bf16.mxu0 %v791_v6 }
   0x2   :  { %v44_v3 = vcombine.high %v40_v0, %v40_v0  ;;  %v49_v4 = vsel %vm48_vm0, %v40_v0, 0.0  ;;  %v45_v5 = vcombine.high %v41_v1, %v41_v1  ;;  %v54_v7 = vsel %vm48_vm0, %v41_v1, 0.0  ;;  %v135_v9 = vld [vmem:[%s1007_s1] sm:$0x3] }
   0x3   :  { %v76_v8 = vshrl.u32 %v73_v2, 7 }
   0x4   :  { %v50_v10 = vsel %vm48_vm0, %v44_v3, 0.0  ;;  %v55_v11 = vsel %vm48_vm0, %v45_v5, 0.0 }
   0x5   :  { %v51_v12 = vadd.f32 %v50_v10, %v49_v4  ;;  %v138_v13 = vsub.s32 0, %v76_v8  ;;  %v145_v14 = vsub.s32 1, %v76_v8  ;;  %v56_v15 = vadd.f32 %v55_v11, %v54_v7 }
   0x7   :  { %52 = vadd.xlane.f32.xlu0 %v51_v12  ;;  %v139_v16 = vrot.slane %v135_v9, %v138_v13  ;;  %v146_v17 = vrot.slane %v135_v9, %v145_v14 }
   0x9   :  { %141 = vbcast.lane.b32.xlu1 %v139_v16, 256 }
   0xa   :  { %16 = vsyncpa [#allocation3], 0  ;;  %v74_v18 = vand.u32 127, %v73_v2  ;;  %v751_v19 = vld [vmem:[%s1010_s4] sm:$0xff]   ;;  %v752_v21 = vld [vmem:[%s1010_s4 + $0x8] sm:$0xff]   ;;  %vm90_vm1 = vcmask 1041408  }
   0xb   :  { %57 = vadd.xlane.f32.xlu0 %v56_v15  ;;  %650 = vmatpush3.bf16.msra.mxu1 %v751_v19  ;;  %v753_v22 = vld [vmem:[%s1010_s4 + $0x10] sm:$0xff]   ;;  %v61_v23 = vld [vmem:[%s1008_s2] sm:$0x3]  ;;  %v754_v24 = vld [vmem:[%s1010_s4 + $0x18] sm:$0xff]   ;;  %vm792_vm2 = vmmov 0   ;;  %vm156_vm3 = vcmask 523264  }
   0xc   :  { %v77_v20 = vsub.s32 %v74_v18, %v76_v8  ;;  %651 = vmatprep.subr.bf16.mxu1 %v791_v6  ;;  %v92_v25 = vsel %vm90_vm1, %v61_v23, 0  ;;  %645 = vmatprep.mubr.msk.bf16.mxu0 %vm792_vm2, %v791_v6  ;;  %vm83_vm6 = vcmask 1041409   ;;  %vm86_vm7 = vcmask 31744   ;;  %v755_v60 = vld [vmem:[%s1011_s5] sm:$0xff]   ;;  %v756_v61 = vld [vmem:[%s1011_s5 + $0x8] sm:$0xff]   ;;  %v759_v14 = vld [vmem:[%s1013_s7 + $0x10] sm:$0xff]  }
   0xd   :  { %148 = vbcast.lane.b32.xlu1 %v146_v17, 256  ;;  %644 = vmatpush3.bf16.msra.mxu0 %v92_v25  ;;  %v588_v2 = vld [vmem:[%s1009_s3] ss:$0 sm:$0xff]  ;;  %vm279_vm8 = vcmask 261120   ;;  %v758_v13 = vld [vmem:[%s1013_s7 + $0x8] sm:$0xff]   ;;  %v760_v15 = vld [vmem:[%s1013_s7 + $0x18] sm:$0xff]  }
   0xe   :  { %661 = vmatprep.subr.bf16.mxu0 %v791_v6  ;;  %657 = vmatprep.mubr.msk.bf16.mxu1 %vm792_vm2, %v791_v6  ;;  %v757_v12 = vld [vmem:[%s1013_s7] sm:$0xff]   ;;  %v409_v17 = vld [vmem:[%s1015_s9 + $0x8] sm:$0xff]  ;;  %v793_v19 = vmov 0.0|0.0  }
   0xf   :  { %652 = vmatpush3.bf16.msra.mxu1 %v752_v21  ;;  %v408_v16 = vld [vmem:[%s1015_s9] sm:$0xff]  ;;  %v411_v21 = vld [vmem:[%s1015_s9 + $0x18] sm:$0xff] }
  0x10   :  { %653 = vmatprep.subr.bf16.mxu1 %v791_v6  ;;  %v412_v23 = vld [vmem:[%s1015_s9 + $0x20] sm:$0xff] }
  0x13   :  { %654 = vmatpush3.bf16.msra.mxu1 %v753_v22 }
  0x14   :  { %655 = vmatprep.subr.bf16.mxu1 %v791_v6 }
  0x17   :  { %656 = vmatpush3.bf16.msra.mxu1 %v754_v24  ;;  %v413_v24 = vld [vmem:[%s1015_s9 + $0x28] sm:$0xff] }
  0x18   :  { %721 = vmatprep.subr.bf16.mxu1 %v793_v19  ;;  %v728_v25 = vpack.c.bf16 %v413_v24, %v412_v23 }
  0x7b   :  { %v142_v26 = vpop.permute.xlu1 %141 }
  0x7c   :  { %vm150_vm4 = vcmp.eq.s32.totalorder %v142_v26, %v74_v18  ;;  %v414_v26 = vld [vmem:[%s1015_s9 + $0x30] sm:$0xff] }
  0x7d   :  { %v590_v27 = vsel %vm150_vm4, 1.0, %v791_v6 }
  0x7e   :  { %v157_v28 = vsel %vm156_vm3, %v590_v27, 0.0  ;;  %v415_v27 = vld [vmem:[%s1015_s9 + $0x38] sm:$0xff] }
  0x7f   :  { %v158_v29 = vrot.slane %v157_v28, 4  ;;  %v149_v30 = vpop.permute.xlu1 %148 }
  0x80   :  { %vm151_vm5 = vcmp.eq.s32.totalorder %v149_v30, %v74_v18  ;;  %v410_v18 = vld [vmem:[%s1015_s9 + $0x10] sm:$0xff]  ;;  %v417_v30 = vld [vmem:[%s1015_s9 + $0x48] sm:$0xff] }
  0x81   :  { %v159_v31 = vadd.f32 %v158_v29, %v157_v28  ;;  %v591_v32 = vsel %vm151_vm5, 1.0, %v791_v6  ;;  %v725_v22 = vpack.c.bf16 %v411_v21, %v410_v18  ;;  %v731_v28 = vpack.c.bf16 %v415_v27, %v414_v26  ;;  %v416_v29 = vld [vmem:[%s1015_s9 + $0x40] sm:$0xff] }
  0x82   :  { %v164_v33 = vsel %vm156_vm3, %v591_v32, 0.0  ;;  %v418_v32 = vld [vmem:[%s1015_s9 + $0x50] sm:$0xff] }
  0x83   :  { %v160_v34 = vrot.slane %v159_v31, 2  ;;  %v165_v35 = vrot.slane %v164_v33, 4 }
  0x85   :  { %v161_v36 = vadd.f32 %v160_v34, %v159_v31  ;;  %v166_v37 = vadd.f32 %v165_v35, %v164_v33  ;;  %v734_v31 = vpack.c.bf16 %v417_v30, %v416_v29  ;;  %v419_v33 = vld [vmem:[%s1015_s9 + $0x58] sm:$0xff]  ;;  %v420_v35 = vld [vmem:[%s1015_s9 + $0x60] sm:$0xff] }
  0x86   :  { %v737_v34 = vpack.c.bf16 %v419_v33, %v418_v32 }
  0x87   :  { %v162_v38 = vrot.slane %v161_v36, 1  ;;  %v167_v39 = vrot.slane %v166_v37, 2 }
  0x89   :  { %v163_v40 = vadd.f32 %v162_v38, %v161_v36  ;;  %v168_v41 = vadd.f32 %v167_v39, %v166_v37  ;;  %v421_v36 = vld [vmem:[%s1015_s9 + $0x68] sm:$0xff]  ;;  %v597_v38 = vld [vmem:[%s1012_s6] ss:$0 sm:$0xff] }
  0x8a   :  { %v740_v37 = vpack.c.bf16 %v421_v36, %v420_v35 }
  0x8b   :  { %v171_v42 = vpack.c.bf16 %v163_v40, %v163_v40  ;;  %v169_v43 = vrot.slane %v168_v41, 1 }
  0x8d   :  { %v170_v44 = vadd.f32 %v169_v43, %v168_v41  ;;  %v183_v45 = vunpack.c.l.b16 %v171_v42 }
  0x8f   :  { %v172_v46 = vpack.c.bf16 %v170_v44, %v170_v44 }
  0x91   :  { %v184_v47 = vunpack.c.l.b16 %v172_v46  ;;  %v422_v46 = vld [vmem:[%s1015_s9 + $0x70] sm:$0xff] }
  0x93   :  { %v185_v48 = vsel %vm83_vm6, %v184_v47, %v183_v45  ;;  %v423_v47 = vld [vmem:[%s1015_s9 + $0x78] sm:$0xff]  ;;  %s794_s9 = smov [#allocation2]  }
  0x94   :  { %v53_v49 = vpop.xlane.xlu0 %52  ;;  %v186_v50 = vpack.c.b16 %v185_v48, %v185_v48  ;;  %v743_v48 = vpack.c.bf16 %v423_v47, %v422_v46 }
  0x95   :  { %v59_v51 = vpack.c.bf16 %v53_v49, %v53_v49  ;;  %v494_v49 = vld [vmem:[%s1016_s10] sm:$0xf]  ;;  %s580_s10 = sshll.u32 %s794_s9, 4  ;;  %s581_s10 = int_to_ptr.vmem [resolvable:$true] %s580_s10 }
  0x96   :  { %658 = vmatmul.mubr.msk.bf16.vlgmr.msra.gmra.mrb[0].mxu1 %vm156_vm3, %v186_v50  ;;  %p772_p1 = scmp.lt.s32.totalorder %s581_s10, %s581_s10 }
  0x97   :  { %713 = vmatprep.mubr.msk.f32.mxu1 %vm792_vm2, %v791_v6  ;;  %v71_v53 = vunpack.c.l.b16 %v59_v51 }
  0x98   :  { %v58_v52 = vpop.xlane.xlu0 %57 }
  0x99   :  { %v60_v54 = vpack.c.bf16 %v58_v52, %v58_v52  ;;  %v78_v56 = vrot.slane %v71_v53, %v77_v20 }
  0x9b   :  { %v72_v55 = vunpack.c.l.b16 %v60_v54 }
  0x9d   :  { %v82_v57 = vrot.slane %v72_v55, %v77_v20  ;;  %v722_v20 = vpack.c.bf16 %v409_v17, %v408_v16 }
  0x9f   :  { %v84_v58 = vsel %vm83_vm6, %v82_v57, %v78_v56  ;;  %723 = vmatpush3.bf16.msra.mxu1 %v722_v20 }
  0xa0   :  { %v85_v59 = vpack.c.b16 %v84_v58, %v84_v58  ;;  %724 = vmatprep.subr.bf16.mxu1 %v793_v19 }
  0xa2   :  { %646 = vmatmul.mubr.msk.bf16.vlgmr.msra.gmra.mrb[0].mxu0 %vm86_vm7, %v85_v59 }
  0xa3   :  { %665 = vmatprep.mubr.msk.bf16.mxu0 %vm792_vm2, %v791_v6  ;;  %662 = vmatpush3.bf16.msra.mxu0 %v755_v60 }
  0xa4   :  { %663 = vmatprep.subr.bf16.mxu0 %v791_v6  ;;  %726 = vmatpush3.bf16.msra.mxu1 %v725_v22 }
  0xa5   :  { %727 = vmatprep.subr.bf16.mxu1 %v793_v19 }
  0xa7   :  { %664 = vmatpush3.bf16.msra.mxu0 %v756_v61 }
  0xa8   :  { %669 = vmatprep.subr.bf16.mxu0 %v791_v6  ;;  %729 = vmatpush3.bf16.msra.mxu1 %v728_v25 }
  0xa9   :  { %730 = vmatprep.subr.bf16.mxu1 %v793_v19 }
  0xac   :  { %732 = vmatpush3.bf16.msra.mxu1 %v731_v28 }
  0xad   :  { %733 = vmatprep.subr.bf16.mxu1 %v793_v19 }
  0xb0   :  { %735 = vmatpush3.bf16.msra.mxu1 %v734_v31 }
  0xb1   :  { %736 = vmatprep.subr.bf16.mxu1 %v793_v19 }
  0xb4   :  { %738 = vmatpush3.bf16.msra.mxu1 %v737_v34 }
  0xb5   :  { %739 = vmatprep.subr.bf16.mxu1 %v793_v19 }
  0xb8   :  { %741 = vmatpush3.bf16.msra.mxu1 %v740_v37 }
  0xb9   :  { %742 = vmatprep.subr.bf16.mxu1 %v793_v19 }
  0xbc   :  { %744 = vmatpush3.bf16.msra.mxu1 %v743_v48 }
 0x169   :  { %v248_v62 = vpop.f32.mrb[0].mxu1 }
 0x16a   :  { %v659_v63 = vpop.f32.mrb[1].mxu1 }
 0x16b   :  { %v251_v0 = vpop.f32.mrb[2].mxu1 }
 0x16c   :  { %v660_v1 = vpop.f32.mrb[3].mxu1 }
 0x175   :  { %v128_v3 = vpop.f32.mrb[0].mxu0 }
 0x176   :  { %v129_v4 = vadd.f32 %v588_v2, %v128_v3  ;;  %v647_v5 = vpop.f32.mrb[1].mxu0 }
 0x177   :  { %v131_v7 = vpop.f32.mrb[2].mxu0 }
 0x178   :  { %761 = vtanh.f32 %v129_v4  ;;  %v648_v8 = vpop.f32.mrb[3].mxu0 }
 0x182   :  { %v762_v9 = vpop.eup %761 }
 0x183   :  { %v254_v10 = vadd.f32 %v762_v9, %v248_v62 }
 0x185   :  { %v255_v11 = vpack.c.bf16 %v254_v10, %v254_v10 }
 0x187   :  { %666 = vmatmul.mubr.msk.bf16.vlgmr.msra.gmra.mrb[4].mxu0 %vm279_vm8, %v255_v11 }
 0x188   :  { %677 = vmatprep.mubr.msk.bf16.mxu0 %vm792_vm2, %v791_v6  ;;  %670 = vmatpush3.bf16.msra.mxu0 %v757_v12 }
 0x189   :  { %671 = vmatprep.subr.bf16.mxu0 %v791_v6 }
 0x18c   :  { %672 = vmatpush3.bf16.msra.mxu0 %v758_v13 }
 0x18d   :  { %673 = vmatprep.subr.bf16.mxu0 %v791_v6 }
 0x190   :  { %674 = vmatpush3.bf16.msra.mxu0 %v759_v14 }
 0x191   :  { %675 = vmatprep.subr.bf16.mxu0 %v791_v6 }
 0x194   :  { %676 = vmatpush3.bf16.msra.mxu0 %v760_v15 }
 0x195   :  { %716 = vmatprep.subr.mxu0 %v791_v6 }
 0x25a   :  { %v317_v39 = vpop.f32.mrb[4].mxu0 }
 0x25b   :  { %v318_v40 = vadd.f32 %v597_v38, %v317_v39  ;;  %v667_v41 = vpop.f32.mrb[5].mxu0 }
 0x25c   :  { %v320_v42 = vpop.f32.mrb[6].mxu0 }
 0x25d   :  { %763 = vtanh.f32 %v318_v40  ;;  %v668_v43 = vpop.f32.mrb[7].mxu0 }
 0x267   :  { %v764_v44 = vpop.eup %763 }
 0x268   :  { %v324_v45 = vpack.c.bf16 %v764_v44, %v764_v44 }
 0x26a   :  { %678 = vmatmul.mubr.msk.bf16.vlgmr.msra.gmra.mrb[8].mxu0 %vm156_vm3, %v324_v45 }
 0x26b   :  { %718 = vmatprep.mubr.msk.f32.mxu0 %vm792_vm2, %v791_v6  ;;  %717 = vmatpush3.msk.msra.mxu0 %vm48_vm0, %v494_v49  ;;  %v601_v6 = vld [vmem:[%s1014_s8] ss:$0 sm:$0xff]  ;;  %s767_s8 = scalar_lea.vmem %s581_s10, 32 }
 0x26c   :  { %p768_p0 = scmp.ne.s32.totalorder %s581_s10, %s767_s8  ;;  %p773_p2 = scmp.lt.s32.totalorder %s767_s8, %s767_s8 }
 0x26e   :  { %p774_p3 = por %p773_p2, %p772_p1 }
 0x270   :  { %p775_p4 = pnand %p774_p3, %p768_p0 }
 0x33d   :  { %v401_v50 = vpop.f32.mrb[8].mxu0 }
 0x33e   :  { %v402_v51 = vadd.f32 %v601_v6, %v401_v50  ;;  %v679_v52 = vpop.f32.mrb[9].mxu0 }
 0x33f   :  { %v404_v53 = vpop.f32.mrb[10].mxu0 }
 0x340   :  { %v407_v54 = vmul.f32 %v402_v51, %v402_v51  ;;  %v680_v55 = vpop.f32.mrb[11].mxu0 }
 0x342   :  { %714 = vmatmul.mubr.f32.vlgmr.msra.gmra.mrb[4].mxu1 %v407_v54 }
 0x415   :  { %v490_v56 = vpop.f32.mrb[4].mxu1 }
 0x416   :  { %v715_v57 = vpop.f32.mrb[5].mxu1  ;;  %719 = vmatmul.mubr.msk.f32.vlgmr.msra.gmra.mrb[12].mxu0 %vm86_vm7, %v490_v56 }
 0x4e9   :  { %v567_v58 = vpop.f32.mrb[12].mxu0 }
 0x4ea   :  { %v568_v59 = vadd.f32 1e-06, %v567_v58  ;;  %v720_v60 = vpop.f32.mrb[13].mxu0 }
 0x4ec   :  { %765 = vrsqrt.f32 %v568_v59 }
 0x4f6   :  { %v766_v61 = vpop.eup %765 }
 0x4f7   :  { %v572_v62 = vmul.f32 %v766_v61, %v402_v51 }
 0x4f9   :  { %573 = vst [vmem:[#allocation2] sm:$0x3] %v572_v62 }
 0x4fa   :  { %778 = shalt.err (!%p775_p4)
}
 0x4fb   :  { %s779_s4 = scalar_lea.hbm %s1017_s11, 32 }
 0x4fc   :  { %p780_p5 = scmp.ne.s32.totalorder %s1017_s11, %s779_s4  ;;  %p783_p6 = scmp.lt.u32.totalorder %s779_s4, %s1017_s11 }
 0x4fe   :  { %p785_p7 = pnand %p783_p6, %p780_p5 }
 0x500   :  { %788 = shalt.err (!%p785_p7)
}
 0x501   :  { %583 = dma.vmem_to_hbm [thread:$0]  %s581_s10, 32, %s1017_s11, [#allocation3]  }
 0x502   :  { %789 = dma.done.wait [#allocation3], 32  }
 0x503   :  { %790 = vsyncadd [#allocation3], 4294967264 }
 0x504   :  { %587 = vsyncpa [#allocation3], 1 }

</bundles_post_ra>
